<compile_context>
chip_gen: v7x
topology: tpu7x:2x2x1
jax: 0.10.0
libtpu: 0.0.40
codegen_flags: <defaults>
</compile_context>

<pallas_src>
import math
from functools import partial

import jax
import jax.numpy as jnp
from jax.experimental import pallas as pl
from jax.experimental.pallas import tpu as pltpu

EPS = 1e-5                        # PyTorch BatchNorm2d default eps
MATMUL_DTYPE = jnp.bfloat16       # MXU operand dtype (accumulation stays f32)
_VMEM_LIMIT = 32 * 1024 * 1024    # tiles here are tiny; safe on v5e/v6e/v7x


# ----------------------------------------------------------------------------
# Static tiling choices.
# ----------------------------------------------------------------------------
def _choose_lane_pack(N, in_unit, out_unit):
    """Smallest power-of-2 divisor P of N (<=8) making both lane widths >=128."""
    best, p = 1, 1
    while p <= 8 and N % p == 0:
        best = p
        if min(p * in_unit, p * out_unit) >= 128:
            return p
        p *= 2
    return best


def _choose_group_block(G):
    """Lane-groups per grid step: amortize per-step overhead, keep grid >= 2."""
    for b in (8, 4, 2):
        if G % b == 0 and G // b >= 2:
            return b
    return 1


# ----------------------------------------------------------------------------
# BatchNorm batch statistics: single-pass sum / sum-of-squares reduction.
# ----------------------------------------------------------------------------
def _bn_batch_stats(x, gmap, B):
    """x: (G, H, L) packed activations -> (2, Cin) = [sum, sum-of-squares]."""
    G, H, L = x.shape
    Cin = gmap.shape[1]

    def kernel(x_ref, g_ref, o_ref):
        @pl.when(pl.program_id(0) == 0)
        def _init():
            o_ref[...] = jnp.zeros_like(o_ref)

        s1 = jnp.zeros((1, L), jnp.float32)
        s2 = jnp.zeros((1, L), jnp.float32)
        for b in range(B):                              # static unroll
            xv = x_ref[b]                               # (H, L)
            s1 = s1 + jnp.sum(xv, axis=0, keepdims=True)
            s2 = s2 + jnp.sum(xv * xv, axis=0, keepdims=True)
        rows = jnp.concatenate([s1, s2], axis=0)        # (2, L)
        o_ref[...] += jnp.dot(rows, g_ref[...],
                              preferred_element_type=jnp.float32)

    return pl.pallas_call(
        kernel,
        out_shape=jax.ShapeDtypeStruct((2, Cin), jnp.float32),
        grid=(G // B,),
        in_specs=[pl.BlockSpec((B, H, L), lambda g: (g, 0, 0)),
                  pl.BlockSpec((L, Cin), lambda g: (0, 0))],
        out_specs=pl.BlockSpec((2, Cin), lambda g: (0, 0)),   # accumulator
        compiler_params=pltpu.CompilerParams(
            dimension_semantics=("arbitrary",),               # reduction axis
            vmem_limit_bytes=_VMEM_LIMIT),
    )(x, gmap)


# ----------------------------------------------------------------------------
# Block-Toeplitz conv weights: dx taps, column zero padding, stride-2 column
# subsampling and nearest-x2 column upsampling folded into one slab per dy.
# ----------------------------------------------------------------------------
def _build_toeplitz_weights(w, *, stride, upsample, Win, Wout):
    """w: (3, 3, Cin, Cout) HWIO -> M: (3, Win*Cin, Wout*Cout)."""
    Wc = 2 * Win if upsample else Win                    # conv-input width
    dx = jnp.arange(3)[:, None]                          # (3, 1)
    xo = jnp.arange(Wout)[None, :]                       # (1, Wout)
    col = xo * stride + dx - 1                           # (3, Wout)
    valid = (col >= 0) & (col < Wc)
    src = col // 2 if upsample else col
    taps = ((src[:, None, :] == jnp.arange(Win)[None, :, None])
            & valid[:, None, :]).astype(w.dtype)         # (3, Win, Wout)
    m = jnp.einsum("dwx,kdio->kwixo", taps, w)           # (3, Win, Cin, Wout, Cout)
    Cin, Cout = w.shape[2], w.shape[3]
    return m.reshape(3, Win * Cin, Wout * Cout)


def _pack_and_combine_weights(M, *, P, upsample):
    """Block-diag over the P lane-packed images; for nearest-x2 H-upsample,
    fold the even/odd output-row planes into extra output lanes."""
    eye = jnp.eye(P, dtype=M.dtype)
    nd, ra, cb = M.shape
    Mp = jnp.einsum("pq,dab->dpaqb", eye, M).reshape(nd, P * ra, P * cb)
    if not upsample:
        return Mp.astype(MATMUL_DTYPE)
    z = jnp.zeros_like(Mp[0])
    # E[i] = src[i-1] @ M0 + src[i] @ (M1+M2)   (even output rows 2i)
    # O[i] = src[i] @ (M0+M1) + src[i+1] @ M2   (odd  output rows 2i+1)
    even = (Mp[0], Mp[1] + Mp[2], z)
    odd = (z, Mp[0] + Mp[1], Mp[2])
    Meff = jnp.stack([jnp.concatenate([e, o], axis=-1)
                      for e, o in zip(even, odd)], axis=0)
    return Meff.astype(MATMUL_DTYPE)                     # (3, P*A, 2*P*B)


# ----------------------------------------------------------------------------
# Fused [BN scale/shift] -> [ReLU] -> 3x3 conv (stride / upsample in weights).
# ----------------------------------------------------------------------------
def _make_conv_kernel(B, Hin, Hrows, stride, use_bn, use_relu, lanes):
    def kernel(x_ref, m_ref, scale_ref, shift_ref, o_ref, xpad_ref):
        # Re-zero only the two border rows each step.  Not hoisted under
        # program_id==0: with "parallel" semantics core 1's first step has a
        # nonzero program_id and scratch is per-core.
        zrow = jnp.zeros((1, lanes), jnp.float32)
        xpad_ref[pl.ds(0, 1), :] = zrow
        xpad_ref[pl.ds(Hin + 1, 1), :] = zrow

        m0 = m_ref[0]                                    # (lanes, out_lanes) bf16
        m1 = m_ref[1]
        m2 = m_ref[2]

        for b in range(B):                               # static unroll over groups
            a = x_ref[b]                                 # (Hin, lanes) f32
            if use_bn:
                a = a * scale_ref[...] + shift_ref[...]  # folded BN, lane-dense
            if use_relu:
                a = jnp.maximum(a, 0.0)
            xpad_ref[pl.ds(1, Hin), :] = a               # middle rows of pad slab

            if stride == 1:
                top = xpad_ref[pl.ds(0, Hrows), :]
                mid = a                                  # == xpad rows 1..Hin, no reload
                bot = xpad_ref[pl.ds(2, Hrows), :]
            else:                                        # stride 2: even output rows
                top = xpad_ref[pl.ds(0, Hrows, stride=2), :]
                mid = xpad_ref[pl.ds(1, Hrows, stride=2), :]
                bot = xpad_ref[pl.ds(2, Hrows, stride=2), :]

            acc = jnp.dot(top.astype(MATMUL_DTYPE), m0,
                          preferred_element_type=jnp.float32)
            acc += jnp.dot(mid.astype(MATMUL_DTYPE), m1,
                           preferred_element_type=jnp.float32)
            acc += jnp.dot(bot.astype(MATMUL_DTYPE), m2,
                           preferred_element_type=jnp.float32)
            o_ref[b] = acc                               # lane-dense store

    return kernel


def _fused_bn_relu_conv(x, M, scale_row, shift_row, *, B, Hrows, out_lanes,
                        stride, use_bn, use_relu):
    G, Hin, L = x.shape
    kernel = _make_conv_kernel(B, Hin, Hrows, stride, use_bn, use_relu, L)
    return pl.pallas_call(
        kernel,
        out_shape=jax.ShapeDtypeStruct((G, Hrows, out_lanes), jnp.float32),
        grid=(G // B,),
        in_specs=[
            pl.BlockSpec((B, Hin, L), lambda g: (g, 0, 0)),   # B lane-groups / step
            pl.BlockSpec(M.shape, lambda g: (0, 0, 0)),       # Toeplitz weights
            pl.BlockSpec((1, L), lambda g: (0, 0)),           # BN scale row
            pl.BlockSpec((1, L), lambda g: (0, 0)),           # BN shift row
        ],
        out_specs=pl.BlockSpec((B, Hrows, out_lanes), lambda g: (g, 0, 0)),
        scratch_shapes=[pltpu.VMEM((Hin + 2, L), jnp.float32)],
        compiler_params=pltpu.CompilerParams(
            dimension_semantics=("parallel",),                # groups independent
            vmem_limit_bytes=_VMEM_LIMIT),
    )(x, M, scale_row, shift_row)


# ----------------------------------------------------------------------------
# normal_block forward
# ----------------------------------------------------------------------------
@partial(jax.jit, static_argnums=(2, 3, 4))
def normal_block_forward(x_nchw, params, in_shape, out_shape, first=False):
    """Mirrors normal_block.forward (training-mode BN).  x: (N, Cin, Hin, Win)."""
    Cin, Hin, Win = in_shape
    Cout, Hout, Wout = out_shape
    use_bn = (not first) and (Hin > 1 and Cin > 1)
    use_relu = not first
    upsample = (Hout == Hin * 2)
    stride = 2 if (2 * Hout == Hin) else 1
    if upsample:
        # TODO(synk): general (non-2x) UpsamplingNearest2d target sizes.
        assert Wout == 2 * Win and stride == 1
    N = x_nchw.shape[0]

    # Static tiling: lane-pack P images, B lane-groups per grid step.
    in_unit = Win * Cin
    out_unit = (2 if upsample else 1) * Wout * Cout
    P = _choose_lane_pack(N, in_unit, out_unit)
    G = N // P
    B = _choose_group_block(G)
    L = P * in_unit
    out_lanes = P * out_unit
    Hrows = Hin if upsample else Hout

    # NCHW -> (G, Hin, P*Win*Cin) lane-packed layout (lane order [p][w][cin]).
    # TODO(synk): chained blocks should stay in this layout (drop transposes).
    x = x_nchw.astype(jnp.float32).reshape(G, P, Cin, Hin, Win)
    x = jnp.transpose(x, (0, 3, 1, 4, 2)).reshape(G, Hin, L)

    # BatchNorm (batch statistics) folded into a per-channel scale / shift.
    if use_bn:
        gmap = jnp.tile(jnp.eye(Cin, dtype=jnp.float32), (P * Win, 1))  # (L, Cin)
        sums = _bn_batch_stats(x, gmap, B)               # (2, Cin)
        cnt = float(N * Hin * Win)
        mean = sums[0] / cnt
        var = sums[1] / cnt - mean * mean                # single-pass biased var
        scale = params["gamma"] * jax.lax.rsqrt(var + EPS)
        shift = params["beta"] - mean * scale
    else:
        scale = jnp.ones((Cin,), jnp.float32)
        shift = jnp.zeros((Cin,), jnp.float32)
    scale_row = jnp.tile(scale, P * Win).reshape(1, L)
    shift_row = jnp.tile(shift, P * Win).reshape(1, L)

    # Conv weights: block-Toeplitz per dy, block-diag over P packed images,
    # even/odd output-row planes folded into extra lanes for the H-upsample.
    M = _build_toeplitz_weights(params["w"].astype(jnp.float32),
                                stride=stride, upsample=upsample,
                                Win=Win, Wout=Wout)
    M = _pack_and_combine_weights(M, P=P, upsample=upsample)

    y = _fused_bn_relu_conv(x, M, scale_row, shift_row, B=B, Hrows=Hrows,
                            out_lanes=out_lanes, stride=stride,
                            use_bn=use_bn, use_relu=use_relu)

    # Unpack lanes back to NCHW (interleaving even/odd rows for upsample).
    if upsample:
        y = y.reshape(G, Hin, 2, P, Wout, Cout)
        y = jnp.transpose(y, (0, 3, 5, 1, 2, 4))          # (G,P,Cout,Hin,2,Wout)
        return y.reshape(N, Cout, Hout, Wout)
    y = y.reshape(G, Hout, P, Wout, Cout)
    y = jnp.transpose(y, (0, 2, 4, 1, 3))                 # (G,P,Cout,Hout,Wout)
    return y.reshape(N, Cout, Hout, Wout)


# ----------------------------------------------------------------------------
# Plain-JAX reference (matches PyTorch training-mode forward, f32 HIGHEST).
# ----------------------------------------------------------------------------
def normal_block_reference(x_nchw, params, in_shape, out_shape, first=False):
    Cin, Hin, Win = in_shape
    Cout, Hout, Wout = out_shape
    use_bn = (not first) and (Hin > 1 and Cin > 1)
    x = x_nchw.astype(jnp.float32)
    if not first:
        if use_bn:
            mean = jnp.mean(x, axis=(0, 2, 3), keepdims=True)
            var = jnp.mean(jnp.square(x - mean), axis=(0, 2, 3), keepdims=True)
            g = params["gamma"].reshape(1, Cin, 1, 1)
            b = params["beta"].reshape(1, Cin, 1, 1)
            x = (x - mean) * jax.lax.rsqrt(var + EPS) * g + b
        x = jnp.maximum(x, 0.0)
    if Hout == Hin * 2:
        x = jnp.repeat(jnp.repeat(x, 2, axis=2), 2, axis=3)
        stride = 1
    elif 2 * Hout == Hin:
        stride = 2
    else:
        stride = 1
    return jax.lax.conv_general_dilated(
        x, params["w"], window_strides=(stride, stride),
        padding=((1, 1), (1, 1)),
        dimension_numbers=("NCHW", "HWIO", "NCHW"),
        precision=jax.lax.Precision.HIGHEST)


def init_params(key, Cin, Cout):
    """Deterministic params matching nn.Conv2d / nn.BatchNorm2d shapes."""
    fan_in = Cin * 9
    bound = 1.0 / math.sqrt(fan_in)
    w = jax.random.uniform(key, (3, 3, Cin, Cout), jnp.float32, -bound, bound)
    return {
        "w": w,                                          # HWIO
        "gamma": jnp.ones((Cin,), jnp.float32),
        "beta": jnp.zeros((Cin,), jnp.float32),
    }


if __name__ == "__main__":
    key = jax.random.PRNGKey(0)
    # (N, in_shape, out_shape, first) with shapes (C, H, W), exercising all
    # three module branches plus lane packing (P=2/4) and B=2 batch tiling.
    configs = [
        (8, (4, 16, 16), (8, 16, 16), False),   # BN+ReLU+conv s1: P=2, G=4, B=2
        (4, (4, 16, 16), (8, 8, 8), False),     # BN+ReLU+conv s2: P=2, G=2, B=1
        (4, (4, 8, 8), (2, 16, 16), True),      # nearest x2 up + conv: P=4
    ]
    # Error budget: bf16 MXU operands round each operand to ~2^-9 relative,
    # accumulated over a 36-tap receptive field (f32 accumulation).
    tol = 2e-3 if MATMUL_DTYPE == jnp.float32 else 5e-2
    for idx, (N, in_shape, out_shape, first) in enumerate(configs):
        kx, kw, key = jax.random.split(key, 3)
        Cin, Hin, Win = in_shape
        x = jax.random.normal(kx, (N, Cin, Hin, Win), jnp.float32)
        params = init_params(kw, Cin, out_shape[0])

        y = jax.block_until_ready(
            normal_block_forward(x, params, in_shape, out_shape, first))
        y_ref = normal_block_reference(x, params, in_shape, out_shape, first)

        assert y.shape == (N,) + tuple(out_shape), (idx, y.shape)
        max_err = float(jnp.max(jnp.abs(y - y_ref)))
        assert jnp.allclose(y, y_ref, atol=tol, rtol=tol), (idx, max_err)

    print("KERNEL_OK")
</pallas_src>

<mosaic_0001>
module attributes {stable_mosaic.version = 11 : i64} {
  func.func @kernel(%arg0: i32, %arg1: memref<2x16x128xf32, #tpu.memory_space<vmem>>, %arg2: memref<128x4xf32, #tpu.memory_space<vmem>>, %arg3: memref<2x4xf32, #tpu.memory_space<vmem>>) attributes {dimension_semantics = [#tpu.dimension_semantics<arbitrary>], iteration_bounds = array<i64: 2>, scalar_prefetch = 0 : i64, scratch_operands = 0 : i64, tpu.core_type = #tpu.core_type<tc>, window_params = [{transform_indices = @transform_0, window_bounds = array<i64: 2, 16, 128>}, {pipeline_mode = #tpu.pipeline_mode<synchronous>, transform_indices = @transform_1, window_bounds = array<i64: 128, 4>}, {pipeline_mode = #tpu.pipeline_mode<synchronous>, transform_indices = @transform_2, window_bounds = array<i64: 2, 4>}]} {
    %c0_i32 = arith.constant 0 : i32
    %0 = arith.cmpi eq, %arg0, %c0_i32 : i32
    %1 = arith.extui %0 : i1 to i32
    %c0_i32_0 = arith.constant 0 : i32
    %2 = arith.cmpi ne, %1, %c0_i32_0 : i32
    scf.if %2 {
      %cst_17 = arith.constant 0.000000e+00 : f32
      %29 = vector.broadcast %cst_17 : f32 to vector<2x4xf32>
      %c0_18 = arith.constant 0 : index
      %c0_19 = arith.constant 0 : index
      %30 = vector.load %arg3[%c0_18, %c0_19] : memref<2x4xf32, #tpu.memory_space<vmem>>, vector<2x4xf32>
      tpu.vector_store %arg3[%c0_18, %c0_19], %29 {strides = array<i32>} : memref<2x4xf32, #tpu.memory_space<vmem>>, vector<2x4xf32>,
    } else {
    }
    %cst = arith.constant 0.000000e+00 : f32
    %3 = vector.broadcast %cst : f32 to vector<1x128xf32>
    %cst_1 = arith.constant 0.000000e+00 : f32
    %4 = vector.broadcast %cst_1 : f32 to vector<1x128xf32>
    %c0 = arith.constant 0 : index
    %c0_2 = arith.constant 0 : index
    %c0_3 = arith.constant 0 : index
    %5 = vector.load %arg1[%c0, %c0_2, %c0_3] : memref<2x16x128xf32, #tpu.memory_space<vmem>>, vector<1x16x128xf32>
    %6 = vector.shape_cast %5 : vector<1x16x128xf32> to vector<16x128xf32>
    %cst_4 = arith.constant dense<0.000000e+00> : vector<128xf32>
    %7 = vector.multi_reduction <add>, %6, %cst_4 [0] : vector<16x128xf32> to vector<128xf32>
    %8 = vector.shape_cast %7 : vector<128xf32> to vector<1x128xf32>
    %9 = arith.addf %3, %8 : vector<1x128xf32>
    %10 = arith.mulf %6, %6 : vector<16x128xf32>
    %cst_5 = arith.constant dense<0.000000e+00> : vector<128xf32>
    %11 = vector.multi_reduction <add>, %10, %cst_5 [0] : vector<16x128xf32> to vector<128xf32>
    %12 = vector.shape_cast %11 : vector<128xf32> to vector<1x128xf32>
    %13 = arith.addf %4, %12 : vector<1x128xf32>
    %c1 = arith.constant 1 : index
    %c0_6 = arith.constant 0 : index
    %c0_7 = arith.constant 0 : index
    %14 = vector.load %arg1[%c1, %c0_6, %c0_7] : memref<2x16x128xf32, #tpu.memory_space<vmem>>, vector<1x16x128xf32>
    %15 = vector.shape_cast %14 : vector<1x16x128xf32> to vector<16x128xf32>
    %cst_8 = arith.constant dense<0.000000e+00> : vector<128xf32>
    %16 = vector.multi_reduction <add>, %15, %cst_8 [0] : vector<16x128xf32> to vector<128xf32>
    %17 = vector.shape_cast %16 : vector<128xf32> to vector<1x128xf32>
    %18 = arith.addf %9, %17 : vector<1x128xf32>
    %19 = arith.mulf %15, %15 : vector<16x128xf32>
    %cst_9 = arith.constant dense<0.000000e+00> : vector<128xf32>
    %20 = vector.multi_reduction <add>, %19, %cst_9 [0] : vector<16x128xf32> to vector<128xf32>
    %21 = vector.shape_cast %20 : vector<128xf32> to vector<1x128xf32>
    %22 = arith.addf %13, %21 : vector<1x128xf32>
    %23 = tpu.concatenate %18, %22 in 0 : vector<1x128xf32>, vector<1x128xf32> -> vector<2x128xf32>
    %c0_10 = arith.constant 0 : index
    %c0_11 = arith.constant 0 : index
    %24 = vector.load %arg3[%c0_10, %c0_11] : memref<2x4xf32, #tpu.memory_space<vmem>>, vector<2x4xf32>
    %c0_12 = arith.constant 0 : index
    %c0_13 = arith.constant 0 : index
    %25 = vector.load %arg2[%c0_12, %c0_13] : memref<128x4xf32, #tpu.memory_space<vmem>>, vector<128x4xf32>
    %cst_14 = arith.constant dense<0.000000e+00> : vector<2x4xf32>
    %26 = tpu.matmul %23, %25, %cst_14 {dimension_numbers = #tpu.dot_dimension_numbers<[1], [0], [0], [1], [0, 0, 1, 1], [], []>} : vector<2x128xf32>, vector<128x4xf32>, vector<2x4xf32> -> vector<2x4xf32>
    %27 = arith.addf %24, %26 : vector<2x4xf32>
    %c0_15 = arith.constant 0 : index
    %c0_16 = arith.constant 0 : index
    %28 = vector.load %arg3[%c0_15, %c0_16] : memref<2x4xf32, #tpu.memory_space<vmem>>, vector<2x4xf32>
    tpu.vector_store %arg3[%c0_15, %c0_16], %27 {strides = array<i32>} : memref<2x4xf32, #tpu.memory_space<vmem>>, vector<2x4xf32>,
    return
  }
  func.func @transform_0(%arg0: i32) -> (i32, i32, i32) {
    %c0_i32 = arith.constant 0 : i32
    %c0_i32_0 = arith.constant 0 : i32
    %c0_i32_1 = arith.constant 0 : i32
    return %arg0, %c0_i32, %c0_i32_0 : i32, i32, i32
  }
  func.func @transform_1(%arg0: i32) -> (i32, i32) {
    %c0_i32 = arith.constant 0 : i32
    %c0_i32_0 = arith.constant 0 : i32
    %c0_i32_1 = arith.constant 0 : i32
    return %c0_i32, %c0_i32_0 : i32, i32
  }
  func.func @transform_2(%arg0: i32) -> (i32, i32) {
    %c0_i32 = arith.constant 0 : i32
    %c0_i32_0 = arith.constant 0 : i32
    %c0_i32_1 = arith.constant 0 : i32
    return %c0_i32, %c0_i32_0 : i32, i32
  }
}

module attributes {stable_mosaic.version = 11 : i64} {
  func.func @kernel(%arg0: i32, %arg1: memref<2x16x128xf32, #tpu.memory_space<vmem>>, %arg2: memref<3x128x256xbf16, #tpu.memory_space<vmem>>, %arg3: memref<1x128xf32, #tpu.memory_space<vmem>>, %arg4: memref<1x128xf32, #tpu.memory_space<vmem>>, %arg5: memref<2x16x256xf32, #tpu.memory_space<vmem>>, %arg6: memref<18x128xf32, #tpu.memory_space<vmem>>) attributes {dimension_semantics = [#tpu.dimension_semantics<parallel>], iteration_bounds = array<i64: 2>, scalar_prefetch = 0 : i64, scratch_operands = 1 : i64, tpu.core_type = #tpu.core_type<tc>, window_params = [{transform_indices = @transform_0, window_bounds = array<i64: 2, 16, 128>}, {pipeline_mode = #tpu.pipeline_mode<synchronous>, transform_indices = @transform_1, window_bounds = array<i64: 3, 128, 256>}, {pipeline_mode = #tpu.pipeline_mode<synchronous>, transform_indices = @transform_2, window_bounds = array<i64: 1, 128>}, {pipeline_mode = #tpu.pipeline_mode<synchronous>, transform_indices = @transform_3, window_bounds = array<i64: 1, 128>}, {transform_indices = @transform_4, window_bounds = array<i64: 2, 16, 256>}]} {
    %cst = arith.constant 0.000000e+00 : f32
    %0 = vector.broadcast %cst : f32 to vector<1x128xf32>
    %c0 = arith.constant 0 : index
    %c0_0 = arith.constant 0 : index
    %1 = vector.load %arg6[%c0, %c0_0] : memref<18x128xf32, #tpu.memory_space<vmem>>, vector<1x128xf32>
    tpu.vector_store %arg6[%c0, %c0_0], %0 {strides = array<i32>} : memref<18x128xf32, #tpu.memory_space<vmem>>, vector<1x128xf32>,
    %c17 = arith.constant 17 : index
    %c0_1 = arith.constant 0 : index
    %2 = vector.load %arg6[%c17, %c0_1] : memref<18x128xf32, #tpu.memory_space<vmem>>, vector<1x128xf32>
    tpu.vector_store %arg6[%c17, %c0_1], %0 {strides = array<i32>} : memref<18x128xf32, #tpu.memory_space<vmem>>, vector<1x128xf32>,
    %c0_2 = arith.constant 0 : index
    %c0_3 = arith.constant 0 : index
    %c0_4 = arith.constant 0 : index
    %3 = vector.load %arg2[%c0_2, %c0_3, %c0_4] : memref<3x128x256xbf16, #tpu.memory_space<vmem>>, vector<1x128x256xbf16>
    %4 = vector.shape_cast %3 : vector<1x128x256xbf16> to vector<128x256xbf16>
    %c1 = arith.constant 1 : index
    %c0_5 = arith.constant 0 : index
    %c0_6 = arith.constant 0 : index
    %5 = vector.load %arg2[%c1, %c0_5, %c0_6] : memref<3x128x256xbf16, #tpu.memory_space<vmem>>, vector<1x128x256xbf16>
    %6 = vector.shape_cast %5 : vector<1x128x256xbf16> to vector<128x256xbf16>
    %c2 = arith.constant 2 : index
    %c0_7 = arith.constant 0 : index
    %c0_8 = arith.constant 0 : index
    %7 = vector.load %arg2[%c2, %c0_7, %c0_8] : memref<3x128x256xbf16, #tpu.memory_space<vmem>>, vector<1x128x256xbf16>
    %8 = vector.shape_cast %7 : vector<1x128x256xbf16> to vector<128x256xbf16>
    %c0_9 = arith.constant 0 : index
    %c0_10 = arith.constant 0 : index
    %c0_11 = arith.constant 0 : index
    %9 = vector.load %arg1[%c0_9, %c0_10, %c0_11] : memref<2x16x128xf32, #tpu.memory_space<vmem>>, vector<1x16x128xf32>
    %10 = vector.shape_cast %9 : vector<1x16x128xf32> to vector<16x128xf32>
    %c0_12 = arith.constant 0 : index
    %c0_13 = arith.constant 0 : index
    %11 = vector.load %arg3[%c0_12, %c0_13] : memref<1x128xf32, #tpu.memory_space<vmem>>, vector<1x128xf32>
    %12 = vector.broadcast %11 : vector<1x128xf32> to vector<16x128xf32>
    %13 = arith.mulf %10, %12 : vector<16x128xf32>
    %c0_14 = arith.constant 0 : index
    %c0_15 = arith.constant 0 : index
    %14 = vector.load %arg4[%c0_14, %c0_15] : memref<1x128xf32, #tpu.memory_space<vmem>>, vector<1x128xf32>
    %15 = vector.broadcast %14 : vector<1x128xf32> to vector<16x128xf32>
    %16 = arith.addf %13, %15 : vector<16x128xf32>
    %cst_16 = arith.constant 0.000000e+00 : f32
    %17 = vector.broadcast %cst_16 : f32 to vector<16x128xf32>
    %18 = arith.maximumf %16, %17 : vector<16x128xf32>
    %c1_17 = arith.constant 1 : index
    %c0_18 = arith.constant 0 : index
    %19 = vector.load %arg6[%c1_17, %c0_18] : memref<18x128xf32, #tpu.memory_space<vmem>>, vector<16x128xf32>
    tpu.vector_store %arg6[%c1_17, %c0_18], %18 {strides = array<i32>} : memref<18x128xf32, #tpu.memory_space<vmem>>, vector<16x128xf32>,
    %c0_19 = arith.constant 0 : index
    %c0_20 = arith.constant 0 : index
    %20 = vector.load %arg6[%c0_19, %c0_20] : memref<18x128xf32, #tpu.memory_space<vmem>>, vector<16x128xf32>
    %c2_21 = arith.constant 2 : index
    %c0_22 = arith.constant 0 : index
    %21 = vector.load %arg6[%c2_21, %c0_22] : memref<18x128xf32, #tpu.memory_space<vmem>>, vector<16x128xf32>
    %22 = arith.truncf %20 : vector<16x128xf32> to vector<16x128xbf16>
    %cst_23 = arith.constant dense<0.000000e+00> : vector<16x256xf32>
    %23 = tpu.matmul %22, %4, %cst_23 {dimension_numbers = #tpu.dot_dimension_numbers<[1], [0], [0], [1], [0, 0, 1, 1], [], []>} : vector<16x128xbf16>, vector<128x256xbf16>, vector<16x256xf32> -> vector<16x256xf32>
    %24 = arith.truncf %18 : vector<16x128xf32> to vector<16x128xbf16>
    %cst_24 = arith.constant dense<0.000000e+00> : vector<16x256xf32>
    %25 = tpu.matmul %24, %6, %cst_24 {dimension_numbers = #tpu.dot_dimension_numbers<[1], [0], [0], [1], [0, 0, 1, 1], [], []>} : vector<16x128xbf16>, vector<128x256xbf16>, vector<16x256xf32> -> vector<16x256xf32>
    %26 = arith.addf %23, %25 : vector<16x256xf32>
    %27 = arith.truncf %21 : vector<16x128xf32> to vector<16x128xbf16>
    %cst_25 = arith.constant dense<0.000000e+00> : vector<16x256xf32>
    %28 = tpu.matmul %27, %8, %cst_25 {dimension_numbers = #tpu.dot_dimension_numbers<[1], [0], [0], [1], [0, 0, 1, 1], [], []>} : vector<16x128xbf16>, vector<128x256xbf16>, vector<16x256xf32> -> vector<16x256xf32>
    %29 = arith.addf %26, %28 : vector<16x256xf32>
    %c0_26 = arith.constant 0 : index
    %c0_27 = arith.constant 0 : index
    %c0_28 = arith.constant 0 : index
    %30 = vector.load %arg5[%c0_26, %c0_27, %c0_28] : memref<2x16x256xf32, #tpu.memory_space<vmem>>, vector<1x16x256xf32>
    %31 = vector.shape_cast %30 : vector<1x16x256xf32> to vector<16x256xf32>
    %32 = vector.shape_cast %29 : vector<16x256xf32> to vector<1x16x256xf32>
    tpu.vector_store %arg5[%c0_26, %c0_27, %c0_28], %32 {strides = array<i32>} : memref<2x16x256xf32, #tpu.memory_space<vmem>>, vector<1x16x256xf32>,
    %c1_29 = arith.constant 1 : index
    %c0_30 = arith.constant 0 : index
    %c0_31 = arith.constant 0 : index
    %33 = vector.load %arg1[%c1_29, %c0_30, %c0_31] : memref<2x16x128xf32, #tpu.memory_space<vmem>>, vector<1x16x128xf32>
    %34 = vector.shape_cast %33 : vector<1x16x128xf32> to vector<16x128xf32>
    %c0_32 = arith.constant 0 : index
    %c0_33 = arith.constant 0 : index
    %35 = vector.load %arg3[%c0_32, %c0_33] : memref<1x128xf32, #tpu.memory_space<vmem>>, vector<1x128xf32>
    %36 = vector.broadcast %35 : vector<1x128xf32> to vector<16x128xf32>
    %37 = arith.mulf %34, %36 : vector<16x128xf32>
    %c0_34 = arith.constant 0 : index
    %c0_35 = arith.constant 0 : index
    %38 = vector.load %arg4[%c0_34, %c0_35] : memref<1x128xf32, #tpu.memory_space<vmem>>, vector<1x128xf32>
    %39 = vector.broadcast %38 : vector<1x128xf32> to vector<16x128xf32>
    %40 = arith.addf %37, %39 : vector<16x128xf32>
    %cst_36 = arith.constant 0.000000e+00 : f32
    %41 = vector.broadcast %cst_36 : f32 to vector<16x128xf32>
    %42 = arith.maximumf %40, %41 : vector<16x128xf32>
    %c1_37 = arith.constant 1 : index
    %c0_38 = arith.constant 0 : index
    %43 = vector.load %arg6[%c1_37, %c0_38] : memref<18x128xf32, #tpu.memory_space<vmem>>, vector<16x128xf32>
    tpu.vector_store %arg6[%c1_37, %c0_38], %42 {strides = array<i32>} : memref<18x128xf32, #tpu.memory_space<vmem>>, vector<16x128xf32>,
    %c0_39 = arith.constant 0 : index
    %c0_40 = arith.constant 0 : index
    %44 = vector.load %arg6[%c0_39, %c0_40] : memref<18x128xf32, #tpu.memory_space<vmem>>, vector<16x128xf32>
    %c2_41 = arith.constant 2 : index
    %c0_42 = arith.constant 0 : index
    %45 = vector.load %arg6[%c2_41, %c0_42] : memref<18x128xf32, #tpu.memory_space<vmem>>, vector<16x128xf32>
    %46 = arith.truncf %44 : vector<16x128xf32> to vector<16x128xbf16>
    %cst_43 = arith.constant dense<0.000000e+00> : vector<16x256xf32>
    %47 = tpu.matmul %46, %4, %cst_43 {dimension_numbers = #tpu.dot_dimension_numbers<[1], [0], [0], [1], [0, 0, 1, 1], [], []>} : vector<16x128xbf16>, vector<128x256xbf16>, vector<16x256xf32> -> vector<16x256xf32>
    %48 = arith.truncf %42 : vector<16x128xf32> to vector<16x128xbf16>
    %cst_44 = arith.constant dense<0.000000e+00> : vector<16x256xf32>
    %49 = tpu.matmul %48, %6, %cst_44 {dimension_numbers = #tpu.dot_dimension_numbers<[1], [0], [0], [1], [0, 0, 1, 1], [], []>} : vector<16x128xbf16>, vector<128x256xbf16>, vector<16x256xf32> -> vector<16x256xf32>
    %50 = arith.addf %47, %49 : vector<16x256xf32>
    %51 = arith.truncf %45 : vector<16x128xf32> to vector<16x128xbf16>
    %cst_45 = arith.constant dense<0.000000e+00> : vector<16x256xf32>
    %52 = tpu.matmul %51, %8, %cst_45 {dimension_numbers = #tpu.dot_dimension_numbers<[1], [0], [0], [1], [0, 0, 1, 1], [], []>} : vector<16x128xbf16>, vector<128x256xbf16>, vector<16x256xf32> -> vector<16x256xf32>
    %53 = arith.addf %50, %52 : vector<16x256xf32>
    %c1_46 = arith.constant 1 : index
    %c0_47 = arith.constant 0 : index
    %c0_48 = arith.constant 0 : index
    %54 = vector.load %arg5[%c1_46, %c0_47, %c0_48] : memref<2x16x256xf32, #tpu.memory_space<vmem>>, vector<1x16x256xf32>
    %55 = vector.shape_cast %54 : vector<1x16x256xf32> to vector<16x256xf32>
    %56 = vector.shape_cast %53 : vector<16x256xf32> to vector<1x16x256xf32>
    tpu.vector_store %arg5[%c1_46, %c0_47, %c0_48], %56 {strides = array<i32>} : memref<2x16x256xf32, #tpu.memory_space<vmem>>, vector<1x16x256xf32>,
    return
  }
  func.func @transform_0(%arg0: i32) -> (i32, i32, i32) {
    %c0_i32 = arith.constant 0 : i32
    %c0_i32_0 = arith.constant 0 : i32
    %c0_i32_1 = arith.constant 0 : i32
    return %arg0, %c0_i32, %c0_i32_0 : i32, i32, i32
  }
  func.func @transform_1(%arg0: i32) -> (i32, i32, i32) {
    %c0_i32 = arith.constant 0 : i32
    %c0_i32_0 = arith.constant 0 : i32
    %c0_i32_1 = arith.constant 0 : i32
    %c0_i32_2 = arith.constant 0 : i32
    return %c0_i32, %c0_i32_0, %c0_i32_1 : i32, i32, i32
  }
  func.func @transform_2(%arg0: i32) -> (i32, i32) {
    %c0_i32 = arith.constant 0 : i32
    %c0_i32_0 = arith.constant 0 : i32
    %c0_i32_1 = arith.constant 0 : i32
    return %c0_i32, %c0_i32_0 : i32, i32
  }
  func.func @transform_3(%arg0: i32) -> (i32, i32) {
    %c0_i32 = arith.constant 0 : i32
    %c0_i32_0 = arith.constant 0 : i32
    %c0_i32_1 = arith.constant 0 : i32
    return %c0_i32, %c0_i32_0 : i32, i32
  }
  func.func @transform_4(%arg0: i32) -> (i32, i32, i32) {
    %c0_i32 = arith.constant 0 : i32
    %c0_i32_0 = arith.constant 0 : i32
    %c0_i32_1 = arith.constant 0 : i32
    return %arg0, %c0_i32, %c0_i32_0 : i32, i32, i32
  }
}

</mosaic_0001>

<bundles_post_ra>
// kernel: tile.23
= control target key start
LH: loop header
LB: loop body
LE: loop exit
PB: predicated region body
PF: predicated region fallthrough
CT: control target
= control target key end

     0   :  { %s40_s0 = inlined_call_operand.vmem [shape: f32[4], index: 0, kind: input, shape index: {}]   ;;  %s41_s1 = inlined_call_operand.vmem [shape: f32[32,4], index: 1, kind: output, shape index: {}]  }
   0x1   :  { %v4_v0 = vld [vmem:[%s40_s0] ss:$0 sm:$0xff] }
   0x2   :  { %5 = vst [vmem:[%s41_s1] sm:$0xff] %v4_v0  ;;  %12 = vst [vmem:[%s41_s1 + $0x8] sm:$0xff] %v4_v0 }
   0x3   :  { %13 = vst [vmem:[%s41_s1 + $0x10] sm:$0xff] %v4_v0  ;;  %14 = vst [vmem:[%s41_s1 + $0x18] sm:$0xff] %v4_v0 }

// kernel: tile.24
= control target key start
LH: loop header
LB: loop body
LE: loop exit
PB: predicated region body
PF: predicated region fallthrough
CT: control target
= control target key end

     0   :  { %s259_s10 = smov 124   ;;  %s260_s11 = smov 116   ;;  %vm3_vm0 = vcmask 31744   ;;  %vm9_vm1 = vcmask 1048544   ;;  %vm15_vm2 = vcmask 1015744   ;;  %vm21_vm3 = vcmask 982944   ;;  %s399_s0 = inlined_call_operand.vmem [shape: f32[32,4], index: 0, kind: input, shape index: {}]   ;;  %s400_s1 = inlined_call_operand.vmem [shape: f32[1,128], index: 1, kind: output, shape index: {}]  }
   0x1   :  { %v197_v0 = vld [vmem:[%s399_s0 + $0x1f] sm:$0x1]   ;;  %v199_v1 = vld [vmem:[%s399_s0 + $0x1d] sm:$0x1]   ;;  %v198_v2 = vld [vmem:[%s399_s0 + $0x1e] sm:$0x1]  }
   0x2   :  { %7 = vrot.lane.b32.xlu0 %v197_v0, %s259_s10  ;;  %19 = vrot.lane.b32.xlu1 %v199_v1, %s260_s11  ;;  %v200_v3 = vld [vmem:[%s399_s0 + $0x1c] sm:$0x1]   ;;  %s261_s16 = smov 120   ;;  %s262_s17 = smov 112   ;;  %v201_v4 = vld [vmem:[%s399_s0 + $0x1b] sm:$0x1]  }
   0x3   :  { %v202_v5 = vld [vmem:[%s399_s0 + $0x1a] sm:$0x1]   ;;  %s263_s22 = smov 108   ;;  %s264_s23 = smov 104   ;;  %v203_v6 = vld [vmem:[%s399_s0 + $0x19] sm:$0x1]  }
   0x4   :  { %v204_v7 = vld [vmem:[%s399_s0 + $0x18] sm:$0x1]   ;;  %s265_s28 = smov 100   ;;  %s266_s29 = smov 96   ;;  %v205_v8 = vld [vmem:[%s399_s0 + $0x17] sm:$0x1]  }
   0x5   :  { %v206_v9 = vld [vmem:[%s399_s0 + $0x16] sm:$0x1]   ;;  %v2_v10 = vld [vmem:[%s399_s0] sm:$0x1]   ;;  %s267_s7 = smov 92   ;;  %s268_s8 = smov 88  }
   0x6   :  { %13 = vrot.lane.b32.xlu0 %v198_v2, %s261_s16  ;;  %25 = vrot.lane.b32.xlu1 %v200_v3, %s262_s17  ;;  %4 = vst.msk [vmem:[#allocation0] sm:$0x1] %vm3_vm0, %v2_v10   ;;  %v207_v11 = vld [vmem:[%s399_s0 + $0x15] sm:$0x1]   ;;  %v208_v12 = vld [vmem:[%s399_s0 + $0x14] sm:$0x1]  }
   0x7   :  { %s269_s13 = smov 84   ;;  %s270_s14 = smov 80   ;;  %v209_v13 = vld [vmem:[%s399_s0 + $0x13] sm:$0x1]   ;;  %v210_v14 = vld [vmem:[%s399_s0 + $0x12] sm:$0x1]  }
   0x8   :  { %s271_s19 = smov 76   ;;  %s272_s20 = smov 72   ;;  %v211_v15 = vld [vmem:[%s399_s0 + $0x11] sm:$0x1]   ;;  %v212_v16 = vld [vmem:[%s399_s0 + $0x10] sm:$0x1]  }
   0x9   :  { %s273_s25 = smov 68   ;;  %s274_s26 = smov 64   ;;  %v213_v17 = vld [vmem:[%s399_s0 + $0xf] sm:$0x1]   ;;  %v214_v18 = vld [vmem:[%s399_s0 + $0xe] sm:$0x1]  }
   0xa   :  { %31 = vrot.lane.b32.xlu0 %v201_v4, %s263_s22  ;;  %37 = vrot.lane.b32.xlu1 %v202_v5, %s264_s23  ;;  %s275_s2 = smov 60   ;;  %s276_s3 = smov 56   ;;  %v215_v19 = vld [vmem:[%s399_s0 + $0xd] sm:$0x1]   ;;  %v216_v20 = vld [vmem:[%s399_s0 + $0xc] sm:$0x1]  }
   0xb   :  { %s278_s9 = smov 48   ;;  %v217_v21 = vld [vmem:[%s399_s0 + $0xb] sm:$0x1]   ;;  %v218_v22 = vld [vmem:[%s399_s0 + $0xa] sm:$0x1]   ;;  %s280_s15 = smov 40  }
   0xc   :  { %v219_v23 = vld [vmem:[%s399_s0 + $0x9] sm:$0x1]   ;;  %v220_v24 = vld [vmem:[%s399_s0 + $0x8] sm:$0x1]   ;;  %s282_s21 = smov 32   ;;  %s284_s27 = smov 24  }
   0xd   :  { %v221_v25 = vld [vmem:[%s399_s0 + $0x7] sm:$0x1]   ;;  %v222_v26 = vld [vmem:[%s399_s0 + $0x6] sm:$0x1]   ;;  %v223_v27 = vld [vmem:[%s399_s0 + $0x5] sm:$0x1]  }
   0xe   :  { %43 = vrot.lane.b32.xlu0 %v203_v6, %s265_s28  ;;  %49 = vrot.lane.b32.xlu1 %v204_v7, %s266_s29  ;;  %v224_v28 = vld [vmem:[%s399_s0 + $0x4] sm:$0x1]   ;;  %s286_s4 = smov 16   ;;  %v225_v29 = vld [vmem:[%s399_s0 + $0x3] sm:$0x1]   ;;  %s288_s10 = smov 8  }
   0xf   :  { %v226_v30 = vld [vmem:[%s399_s0 + $0x2] sm:$0x1]   ;;  %v227_v31 = vld [vmem:[%s399_s0 + $0x1] sm:$0x1]   ;;  %s289_s0 = smov 4   ;;  %vm27_vm4 = vcmask 950144  }
  0x10   :  { %vm33_vm5 = vcmask 917344   ;;  %vm39_vm6 = vcmask 884544   ;;  %vm45_vm7 = vcmask 851744   ;;  %vm51_vm8 = vcmask 818944  }
  0x11   :  { %vm57_vm9 = vcmask 786144   ;;  %vm63_vm10 = vcmask 753344   ;;  %vm69_vm11 = vcmask 720544   ;;  %vm75_vm12 = vcmask 687744  }
  0x12   :  { %55 = vrot.lane.b32.xlu0 %v205_v8, %s267_s7  ;;  %61 = vrot.lane.b32.xlu1 %v206_v9, %s268_s8  ;;  %s277_s8 = smov 52   ;;  %vm81_vm13 = vcmask 654944   ;;  %vm87_vm14 = vcmask 622144   ;;  %vm93_vm15 = vcmask 589344   ;;  %vm99_vm0 = vcmask 556544  }
  0x16   :  { %67 = vrot.lane.b32.xlu0 %v207_v11, %s269_s13  ;;  %73 = vrot.lane.b32.xlu1 %v208_v12, %s270_s14  ;;  %s279_s14 = smov 44  }
  0x1a   :  { %79 = vrot.lane.b32.xlu0 %v209_v13, %s271_s19  ;;  %85 = vrot.lane.b32.xlu1 %v210_v14, %s272_s20  ;;  %s281_s20 = smov 36  }
  0x1e   :  { %91 = vrot.lane.b32.xlu0 %v211_v15, %s273_s25  ;;  %97 = vrot.lane.b32.xlu1 %v212_v16, %s274_s26  ;;  %s283_s26 = smov 28  }
  0x22   :  { %103 = vrot.lane.b32.xlu0 %v213_v17, %s275_s2  ;;  %109 = vrot.lane.b32.xlu1 %v214_v18, %s276_s3  ;;  %s285_s3 = smov 20  }
  0x26   :  { %115 = vrot.lane.b32.xlu0 %v215_v19, %s277_s8  ;;  %121 = vrot.lane.b32.xlu1 %v216_v20, %s278_s9  ;;  %s287_s9 = smov 12  }
  0x2a   :  { %127 = vrot.lane.b32.xlu0 %v217_v21, %s279_s14  ;;  %133 = vrot.lane.b32.xlu1 %v218_v22, %s280_s15 }
  0x2e   :  { %139 = vrot.lane.b32.xlu0 %v219_v23, %s281_s20  ;;  %145 = vrot.lane.b32.xlu1 %v220_v24, %s282_s21 }
  0x32   :  { %151 = vrot.lane.b32.xlu0 %v221_v25, %s283_s26  ;;  %157 = vrot.lane.b32.xlu1 %v222_v26, %s284_s27 }
  0x36   :  { %163 = vrot.lane.b32.xlu0 %v223_v27, %s285_s3  ;;  %169 = vrot.lane.b32.xlu1 %v224_v28, %s286_s4 }
  0x3a   :  { %175 = vrot.lane.b32.xlu0 %v225_v29, %s287_s9  ;;  %181 = vrot.lane.b32.xlu1 %v226_v30, %s288_s10 }
  0x3e   :  { %187 = vrot.lane.b32.xlu0 %v227_v31, %s289_s0 }
  0x74   :  { %v8_v32 = vpop.permute.xlu0 %7   ;;  %v20_v33 = vpop.permute.xlu1 %19  }
  0x75   :  { %10 = vst.msk [vmem:[#allocation0] sm:$0x1] %vm9_vm1, %v8_v32   ;;  %vm105_vm1 = vcmask 523744  }
  0x78   :  { %v14_v34 = vpop.permute.xlu0 %13   ;;  %v26_v35 = vpop.permute.xlu1 %25  }
  0x79   :  { %16 = vst.msk [vmem:[#allocation0] sm:$0x1] %vm15_vm2, %v14_v34   ;;  %vm111_vm2 = vcmask 490944  }
  0x7a   :  { %22 = vst.msk [vmem:[#allocation0] sm:$0x1] %vm21_vm3, %v20_v33   ;;  %vm117_vm3 = vcmask 458144  }
  0x7b   :  { %28 = vst.msk [vmem:[#allocation0] sm:$0x1] %vm27_vm4, %v26_v35   ;;  %vm123_vm4 = vcmask 425344  }
  0x7c   :  { %v32_v36 = vpop.permute.xlu0 %31   ;;  %v38_v37 = vpop.permute.xlu1 %37  }
  0x7d   :  { %34 = vst.msk [vmem:[#allocation0] sm:$0x1] %vm33_vm5, %v32_v36   ;;  %vm129_vm5 = vcmask 392544  }
  0x7e   :  { %40 = vst.msk [vmem:[#allocation0] sm:$0x1] %vm39_vm6, %v38_v37   ;;  %vm135_vm6 = vcmask 359744  }
  0x80   :  { %v44_v38 = vpop.permute.xlu0 %43   ;;  %v50_v39 = vpop.permute.xlu1 %49  }
  0x81   :  { %46 = vst.msk [vmem:[#allocation0] sm:$0x1] %vm45_vm7, %v44_v38   ;;  %vm141_vm7 = vcmask 326944  }
  0x82   :  { %52 = vst.msk [vmem:[#allocation0] sm:$0x1] %vm51_vm8, %v50_v39   ;;  %vm147_vm8 = vcmask 294144  }
  0x84   :  { %v56_v40 = vpop.permute.xlu0 %55   ;;  %v62_v41 = vpop.permute.xlu1 %61  }
  0x85   :  { %58 = vst.msk [vmem:[#allocation0] sm:$0x1] %vm57_vm9, %v56_v40   ;;  %vm153_vm9 = vcmask 261344  }
  0x86   :  { %64 = vst.msk [vmem:[#allocation0] sm:$0x1] %vm63_vm10, %v62_v41   ;;  %vm159_vm10 = vcmask 228544  }
  0x88   :  { %v68_v42 = vpop.permute.xlu0 %67   ;;  %v74_v43 = vpop.permute.xlu1 %73  }
  0x89   :  { %70 = vst.msk [vmem:[#allocation0] sm:$0x1] %vm69_vm11, %v68_v42   ;;  %vm165_vm11 = vcmask 195744  }
  0x8a   :  { %76 = vst.msk [vmem:[#allocation0] sm:$0x1] %vm75_vm12, %v74_v43   ;;  %vm171_vm12 = vcmask 162944  }
  0x8c   :  { %v80_v44 = vpop.permute.xlu0 %79   ;;  %v86_v45 = vpop.permute.xlu1 %85  }
  0x8d   :  { %82 = vst.msk [vmem:[#allocation0] sm:$0x1] %vm81_vm13, %v80_v44   ;;  %vm177_vm13 = vcmask 130144  }
  0x8e   :  { %88 = vst.msk [vmem:[#allocation0] sm:$0x1] %vm87_vm14, %v86_v45   ;;  %vm183_vm14 = vcmask 97344  }
  0x90   :  { %v92_v46 = vpop.permute.xlu0 %91   ;;  %v98_v47 = vpop.permute.xlu1 %97  }
  0x91   :  { %94 = vst.msk [vmem:[#allocation0] sm:$0x1] %vm93_vm15, %v92_v46   ;;  %vm189_vm15 = vcmask 64544  }
  0x92   :  { %100 = vst.msk [vmem:[#allocation0] sm:$0x1] %vm99_vm0, %v98_v47  }
  0x94   :  { %v104_v48 = vpop.permute.xlu0 %103   ;;  %v110_v49 = vpop.permute.xlu1 %109  }
  0x95   :  { %106 = vst.msk [vmem:[#allocation0] sm:$0x1] %vm105_vm1, %v104_v48  }
  0x96   :  { %112 = vst.msk [vmem:[#allocation0] sm:$0x1] %vm111_vm2, %v110_v49  }
  0x98   :  { %v116_v50 = vpop.permute.xlu0 %115   ;;  %v122_v51 = vpop.permute.xlu1 %121  }
  0x99   :  { %118 = vst.msk [vmem:[#allocation0] sm:$0x1] %vm117_vm3, %v116_v50  }
  0x9a   :  { %124 = vst.msk [vmem:[#allocation0] sm:$0x1] %vm123_vm4, %v122_v51  }
  0x9c   :  { %v128_v52 = vpop.permute.xlu0 %127   ;;  %v134_v53 = vpop.permute.xlu1 %133  }
  0x9d   :  { %130 = vst.msk [vmem:[#allocation0] sm:$0x1] %vm129_vm5, %v128_v52  }
  0x9e   :  { %136 = vst.msk [vmem:[#allocation0] sm:$0x1] %vm135_vm6, %v134_v53  }
  0xa0   :  { %v140_v54 = vpop.permute.xlu0 %139   ;;  %v146_v55 = vpop.permute.xlu1 %145  }
  0xa1   :  { %142 = vst.msk [vmem:[#allocation0] sm:$0x1] %vm141_vm7, %v140_v54  }
  0xa2   :  { %148 = vst.msk [vmem:[#allocation0] sm:$0x1] %vm147_vm8, %v146_v55  }
  0xa4   :  { %v152_v56 = vpop.permute.xlu0 %151   ;;  %v158_v57 = vpop.permute.xlu1 %157  }
  0xa5   :  { %154 = vst.msk [vmem:[#allocation0] sm:$0x1] %vm153_vm9, %v152_v56  }
  0xa6   :  { %160 = vst.msk [vmem:[#allocation0] sm:$0x1] %vm159_vm10, %v158_v57  }
  0xa8   :  { %v164_v58 = vpop.permute.xlu0 %163   ;;  %v170_v59 = vpop.permute.xlu1 %169  }
  0xa9   :  { %166 = vst.msk [vmem:[#allocation0] sm:$0x1] %vm165_vm11, %v164_v58  }
  0xaa   :  { %172 = vst.msk [vmem:[#allocation0] sm:$0x1] %vm171_vm12, %v170_v59  }
  0xac   :  { %v176_v60 = vpop.permute.xlu0 %175   ;;  %v182_v61 = vpop.permute.xlu1 %181  }
  0xad   :  { %178 = vst.msk [vmem:[#allocation0] sm:$0x1] %vm177_vm13, %v176_v60  }
  0xae   :  { %184 = vst.msk [vmem:[#allocation0] sm:$0x1] %vm183_vm14, %v182_v61  }
  0xb0   :  { %v188_v62 = vpop.permute.xlu0 %187  }
  0xb1   :  { %190 = vst.msk [vmem:[#allocation0] sm:$0x1] %vm189_vm15, %v188_v62  }
  0xb8   :  { %v194_v63 = vld [vmem:[#allocation0] sm:$0x1] }
  0xb9   :  { %196 = vst [vmem:[%s400_s1] sm:$0x1] %v194_v63 }

// kernel: normal_block_forward.2
= control target key start
LH: loop header
LB: loop body
LE: loop exit
PB: predicated region body
PF: predicated region fallthrough
CT: control target
= control target key end

     0   :  { %s429_s9 = smov 0   ;;  %s508_s0 = inlined_call_operand.vmem [shape: f32[4,16,128], index: 0, kind: input, shape index: {}]   ;;  %s509_s1 = inlined_call_operand.vmem [shape: f32[128,4], index: 1, kind: input, shape index: {}]   ;;  %s510_s2 = inlined_call_operand.vmem [shape: f32[2,4], index: 2, kind: output, shape index: {}]  }
   0x1 LB: > { %s301_s10 = sadd.s32 4294967295, %s408_s9   ;;  %p304_p0 = scmp.ge.s32.totalorder %s408_s9, 1  ;;  %s408_s9 = sphi %s429_s9, %s12_s9  }
   0x2   : > { %p109_p1 = scmp.lt.s32.totalorder %s408_s9, 3 }
   0x4   : > { %p110_p2 = pnand %p304_p0, %p109_p1 }
   0x5   : > { %s305_s11 = sshll.u32 (!%p110_p2), %s301_s10, 1  ;;  %p308_p4 = scmp.ne.s32.totalorder (!%p110_p2), %s301_s10, 0 }
   0x6   : > { %113 = sbr.rel (%p110_p2) target bundleno = 269 (0x10d), region = 28  ;;  %p128_p3 = scmp.lt.s32.totalorder (!%p110_p2), %s305_s11, 3 }
   0xd   : > { %s512_s11 = smov (!%p128_p3, %s305_s11), 3  ;;  %137 = sbr.rel (%p308_p4) target bundleno = 20 (0x14), region = 32 }
   0xe   : > { %s313_s12 = sshll.u32 %s512_s11, 4  ;;  %vm138_vm0 = vcmask (!%p308_p4), 25600   ;;  %v410_v0 = vmov (!%p308_p4), 0.0  }
   0xf   : > { %s132_s15 = scalar_lea.vmem %s508_s0, %s313_s12  ;;  %139 = vst.msk [vmem:[%s510_s2] sm:$0x3] (!%p308_p4), %vm138_vm0, %v410_v0 }
  0x14 PF: > { %v184_v1 = vld [vmem:[%s509_s1] sm:$0xff]  ;;  %v185_v2 = vld [vmem:[%s509_s1 + $0x8] sm:$0xff]  ;;  %v186_v3 = vld [vmem:[%s509_s1 + $0x10] sm:$0xff]  ;;  %v411_v4 = vmov 0.0|0.0   ;;  %vm412_vm1 = vmmov 0   ;;  %v413_v7 = vmov 0.0  }
  0x15   : > { %366 = vmatprep.subr.bf16.mxu0 %v411_v4  ;;  %v367_v5 = vpack.c.bf16 %v185_v2, %v184_v1  ;;  %v187_v6 = vld [vmem:[%s509_s1 + $0x18] sm:$0xff]  ;;  %363 = vmatprep.mubr.msk.f32.mxu0 %vm412_vm1, %v413_v7  ;;  %v188_v9 = vld [vmem:[%s509_s1 + $0x20] sm:$0xff]  ;;  %v189_v10 = vld [vmem:[%s509_s1 + $0x28] sm:$0xff]  ;;  %vm181_vm2 = vcmask 1040384   ;;  %vm271_vm3 = vcmask 25600  }
  0x16   : > { %v370_v8 = vpack.c.bf16 %v187_v6, %v186_v3  ;;  %v140_v11 = vld [vmem:[%s132_s15] sm:$0xff]  ;;  %v141_v12 = vld [vmem:[%s132_s15 + $0x8] sm:$0xff]  ;;  %v309_v16 = vld [vmem:[%s132_s15 + $0x10] sm:$0xff]  ;;  %v373_v18 = vpack.c.bf16 %v189_v10, %v188_v9 }
  0x17   : > { %368 = vmatpush3.bf16.msra.mxu0 %v367_v5  ;;  %v142_v13 = vadd.f32 %v141_v12, %v140_v11  ;;  %v150_v14 = vmul.f32 %v140_v11, %v140_v11  ;;  %v151_v15 = vmul.f32 %v141_v12, %v141_v12  ;;  %v310_v17 = vld [vmem:[%s132_s15 + $0x18] sm:$0xff]  ;;  %v171_v20 = vmul.f32 %v309_v16, %v309_v16  ;;  %v190_v22 = vld [vmem:[%s509_s1 + $0x30] sm:$0xff]  ;;  %v192_v33 = vld [vmem:[%s509_s1 + $0x40] sm:$0xff] }
  0x18   : > { %369 = vmatprep.subr.bf16.mxu0 %v411_v4  ;;  %v163_v19 = vadd.f32 %v310_v17, %v309_v16  ;;  %v172_v21 = vmul.f32 %v310_v17, %v310_v17  ;;  %v191_v23 = vld [vmem:[%s509_s1 + $0x38] sm:$0xff]  ;;  %v193_v34 = vld [vmem:[%s509_s1 + $0x48] sm:$0xff]  ;;  %v194_v41 = vld [vmem:[%s509_s1 + $0x50] sm:$0xff] }
  0x19   : > { %v143_v24 = vrot.slane %v142_v13, 4  ;;  %v152_v25 = vadd.f32 %v151_v15, %v150_v14  ;;  %v376_v30 = vpack.c.bf16 %v191_v23, %v190_v22  ;;  %v379_v40 = vpack.c.bf16 %v193_v34, %v192_v33  ;;  %v195_v42 = vld [vmem:[%s509_s1 + $0x58] sm:$0xff]  ;;  %v196_v49 = vld [vmem:[%s509_s1 + $0x60] sm:$0xff]  ;;  %v197_v50 = vld [vmem:[%s509_s1 + $0x68] sm:$0xff] }
  0x1a   : > { %v164_v26 = vrot.slane %v163_v19, 4  ;;  %v173_v27 = vadd.f32 %v172_v21, %v171_v20  ;;  %v382_v48 = vpack.c.bf16 %v195_v42, %v194_v41  ;;  %v385_v55 = vpack.c.bf16 %v197_v50, %v196_v49  ;;  %v198_v60 = vld [vmem:[%s509_s1 + $0x70] sm:$0xff]  ;;  %v199_v61 = vld [vmem:[%s509_s1 + $0x78] sm:$0xff]  ;;  %v183_v2 = vld [vmem:[%s510_s2] sm:$0x3] }
  0x1b   : > { %371 = vmatpush3.bf16.msra.mxu0 %v370_v8  ;;  %v144_v28 = vadd.f32 %v143_v24, %v142_v13  ;;  %v153_v29 = vrot.slane %v152_v25, 4  ;;  %v388_v62 = vpack.c.bf16 %v199_v61, %v198_v60 }
  0x1c   : > { %372 = vmatprep.subr.bf16.mxu0 %v411_v4  ;;  %v165_v31 = vadd.f32 %v164_v26, %v163_v19  ;;  %v174_v32 = vrot.slane %v173_v27, 4 }
  0x1d   : > { %v145_v35 = vrot.slane %v144_v28, 2  ;;  %v154_v36 = vadd.f32 %v153_v29, %v152_v25 }
  0x1e   : > { %v166_v37 = vrot.slane %v165_v31, 2  ;;  %v175_v38 = vadd.f32 %v174_v32, %v173_v27 }
  0x1f   : > { %374 = vmatpush3.bf16.msra.mxu0 %v373_v18  ;;  %v155_v39 = vrot.slane %v154_v36, 2  ;;  %v146_v43 = vadd.f32 %v145_v35, %v144_v28 }
  0x20   : > { %375 = vmatprep.subr.bf16.mxu0 %v411_v4  ;;  %v167_v44 = vadd.f32 %v166_v37, %v165_v31  ;;  %v176_v45 = vrot.slane %v175_v38, 2 }
  0x21   : > { %v156_v46 = vadd.f32 %v155_v39, %v154_v36  ;;  %v147_v51 = vrot.slane %v146_v43, 1 }
  0x22   : > { %v177_v47 = vadd.f32 %v176_v45, %v175_v38  ;;  %v168_v53 = vrot.slane %v167_v44, 1 }
  0x23   : > { %377 = vmatpush3.bf16.msra.mxu0 %v376_v30  ;;  %v157_v52 = vrot.slane %v156_v46, 1  ;;  %v148_v56 = vadd.f32 %v147_v51, %v146_v43 }
  0x24   : > { %378 = vmatprep.subr.bf16.mxu0 %v411_v4  ;;  %v178_v54 = vrot.slane %v177_v47, 1  ;;  %v169_v58 = vadd.f32 %v168_v53, %v167_v44 }
  0x25   : > { %v158_v57 = vadd.f32 %v157_v52, %v156_v46 }
  0x26   : > { %v179_v59 = vadd.f32 %v178_v54, %v177_v47  ;;  %v170_v63 = vadd.f32 %v169_v58, %v148_v56 }
  0x27   : > { %380 = vmatpush3.bf16.msra.mxu0 %v379_v40 }
  0x28   : > { %381 = vmatprep.subr.bf16.mxu0 %v411_v4  ;;  %v180_v0 = vadd.f32 %v179_v59, %v158_v57 }
  0x2a   : > { %v182_v1 = vsel %vm181_vm2, %v170_v63, %v180_v0 }
  0x2b   : > { %383 = vmatpush3.bf16.msra.mxu0 %v382_v48 }
  0x2c   : > { %384 = vmatprep.subr.bf16.mxu0 %v411_v4 }
  0x2f   : > { %386 = vmatpush3.bf16.msra.mxu0 %v385_v55 }
  0x30   : > { %387 = vmatprep.subr.bf16.mxu0 %v411_v4 }
  0x33   : > { %389 = vmatpush3.bf16.msra.mxu0 %v388_v62 }
  0x36   : > { %364 = vmatmul.mubr.f32.vlgmr.msra.gmra.mrb[0].mxu0 %v182_v1 }
 0x109   : > { %v266_v3 = vpop.f32.mrb[0].mxu0 }
 0x10a   : > { %v270_v5 = vadd.f32 %v266_v3, %v183_v2  ;;  %v365_v6 = vpop.f32.mrb[1].mxu0 }
 0x10c   : > { %272 = vst.msk [vmem:[%s510_s2] sm:$0x3] %vm271_vm3, %v270_v5 }
 0x10d PF: > { %s12_s9 = sadd.s32 1, %s408_s9  }
 0x10e   : > { %p9_p5 = scmp.ge.s32.totalorder %s12_s9, 4  }
 0x110   :  { %11 = sbr.rel (!%p9_p5) target bundleno = 1 (0x1), region = 59 }

// kernel: normal_block_forward.3
= control target key start
LH: loop header
LB: loop body
LE: loop exit
PB: predicated region body
PF: predicated region fallthrough
CT: control target
= control target key end

     0   :  { %s1133_s15 = smov 0   ;;  %s1325_s0 = inlined_call_operand.vmem [shape: f32[4,16,128], index: 0, kind: input, shape index: {}]   ;;  %s1326_s1 = inlined_call_operand.vmem [shape: bf16[3,128,256], index: 1, kind: input, shape index: {}]   ;;  %s1327_s2 = inlined_call_operand.vmem [shape: f32[1,128], index: 2, kind: input, shape index: {}]   ;;  %s1328_s3 = inlined_call_operand.vmem [shape: f32[1,128], index: 3, kind: input, shape index: {}]   ;;  %s1329_s4 = inlined_call_operand.vmem [shape: f32[4,16,256], index: 4, kind: output, shape index: {}]  }
   0x1 LB: > { %s895_s16 = sadd.s32 4294967295, %s1104_s15   ;;  %p899_p0 = scmp.ge.s32.totalorder %s1104_s15, 1  ;;  %s1104_s15 = sphi %s1133_s15, %s14_s15  }
   0x2   : > { %p164_p1 = scmp.lt.s32.totalorder %s1104_s15, 3 }
   0x4   : > { %p165_p2 = pnand %p899_p0, %p164_p1 }
   0x5   : > { %v1026_v0 = vld [vmem:[%s1326_s1 + $0x84] ss:$8 sps:$4 sm:$0xff] (!%p165_p2)   ;;  %s900_s19 = sshll.u32 (!%p165_p2), %s895_s16, 1  ;;  %v1028_v1 = vld [vmem:[%s1326_s1 + $0x80] ss:$8 sps:$4 sm:$0xff] (!%p165_p2)   ;;  %v1106_v2 = vmov (!%p165_p2), 0  }
   0x6   : > { %168 = sbr.rel (%p165_p2) target bundleno = 319 (0x13f), region = 36  ;;  %401 = vmatprep.mubr.bf16.mxu0 (!%p165_p2), %v1106_v2  ;;  %730 = vmatprep.mubr.bf16.mxu1 (!%p165_p2), %v1106_v2  ;;  %p193_p3 = scmp.lt.s32.totalorder (!%p165_p2), %s900_s19, 3  ;;  %v1029_v3 = vld [vmem:[%s1326_s1 + $0x94] ss:$8 sps:$4 sm:$0xff] (!%p165_p2)   ;;  %v1107_v4 = vmov (!%p165_p2), 0.0  }
   0x7   : > { %369 = vmatprep.subr.bf16.mxu0 (!%p165_p2), %v1026_v0  ;;  %698 = vmatprep.subr.bf16.mxu1 (!%p165_p2), %v1026_v0  ;;  %207 = vst [vmem:[#allocation2] sm:$0x1] (!%p165_p2), %v1107_v4  ;;  %208 = vst [vmem:[#allocation2 + $0x11] sm:$0x1] (!%p165_p2), %v1107_v4  ;;  %v1031_v5 = vld [vmem:[%s1326_s1 + $0x90] ss:$8 sps:$4 sm:$0xff] (!%p165_p2)  }
   0x8   : > { %370 = vmatpush1.bf16.msra.mxu0 (!%p165_p2), %v1028_v1  ;;  %699 = vmatpush1.bf16.msra.mxu1 (!%p165_p2), %v1028_v1  ;;  %v1032_v6 = vld [vmem:[%s1326_s1 + $0xa4] ss:$8 sps:$4 sm:$0xff] (!%p165_p2)   ;;  %v1034_v7 = vld [vmem:[%s1326_s1 + $0xa0] ss:$8 sps:$4 sm:$0xff] (!%p165_p2)   ;;  %v1035_v8 = vld [vmem:[%s1326_s1 + $0xb4] ss:$8 sps:$4 sm:$0xff] (!%p165_p2)  }
   0x9   : > { %371 = vmatprep.subr.bf16.mxu0 (!%p165_p2), %v1029_v3  ;;  %700 = vmatprep.subr.bf16.mxu1 (!%p165_p2), %v1029_v3  ;;  %v1037_v9 = vld [vmem:[%s1326_s1 + $0xb0] ss:$8 sps:$4 sm:$0xff] (!%p165_p2)   ;;  %v1038_v10 = vld [vmem:[%s1326_s1 + $0xc4] ss:$8 sps:$4 sm:$0xff] (!%p165_p2)   ;;  %v938_v13 = vld [vmem:[%s1327_s2] ss:$0 sm:$0xff] (!%p165_p2) }
   0xa   : > { %v1040_v14 = vld [vmem:[%s1326_s1 + $0xc0] ss:$8 sps:$4 sm:$0xff] (!%p165_p2)   ;;  %v1041_v22 = vld [vmem:[%s1326_s1 + $0xd4] ss:$8 sps:$4 sm:$0xff] (!%p165_p2)   ;;  %v1043_v27 = vld [vmem:[%s1326_s1 + $0xd0] ss:$8 sps:$4 sm:$0xff] (!%p165_p2)  }
   0xb   : > { %v939_v17 = vld [vmem:[%s1328_s3] ss:$0 sm:$0xff] (!%p165_p2)  ;;  %v1044_v28 = vld [vmem:[%s1326_s1 + $0xe4] ss:$8 sps:$4 sm:$0xff] (!%p165_p2)   ;;  %v1047_v32 = vld [vmem:[%s1326_s1 + $0xf4] ss:$8 sps:$4 sm:$0xff] (!%p165_p2)  }
   0xc   : > { %372 = vmatpush1.bf16.msra.mxu0 (!%p165_p2), %v1031_v5  ;;  %701 = vmatpush1.bf16.msra.mxu1 (!%p165_p2), %v1031_v5  ;;  %v1046_v31 = vld [vmem:[%s1326_s1 + $0xe0] ss:$8 sps:$4 sm:$0xff] (!%p165_p2)   ;;  %v1049_v33 = vld [vmem:[%s1326_s1 + $0xf0] ss:$8 sps:$4 sm:$0xff] (!%p165_p2)   ;;  %v1052_v40 = vld [vmem:[%s1326_s1 + $0x4] ss:$8 sps:$4 sm:$0xff] (!%p165_p2)  }
   0xd   : > { %s1331_s19 = smov (!%p193_p3, %s900_s19), 3  ;;  %373 = vmatprep.subr.bf16.mxu0 %v1032_v6  ;;  %702 = vmatprep.subr.bf16.mxu1 %v1032_v6  ;;  %v1050_v44 = vld [vmem:[%s1326_s1] ss:$8 sps:$4 sm:$0xff]   ;;  %v1055_v45 = vld [vmem:[%s1326_s1 + $0x14] ss:$8 sps:$4 sm:$0xff]  }
   0xe   : > { %s998_s28 = sshll.u32 %s1331_s19, 4  ;;  %v1053_v46 = vld [vmem:[%s1326_s1 + $0x10] ss:$8 sps:$4 sm:$0xff]   ;;  %v1058_v47 = vld [vmem:[%s1326_s1 + $0x24] ss:$8 sps:$4 sm:$0xff]   ;;  %s999_s26 = sshll.u32 %s1331_s19, 5 }
   0xf   : > { %s197_s9 = scalar_lea.vmem %s1325_s0, %s998_s28  ;;  %v1056_v48 = vld [vmem:[%s1326_s1 + $0x20] ss:$8 sps:$4 sm:$0xff]   ;;  %v1061_v49 = vld [vmem:[%s1326_s1 + $0x34] ss:$8 sps:$4 sm:$0xff]   ;;  %v1059_v50 = vld [vmem:[%s1326_s1 + $0x30] ss:$8 sps:$4 sm:$0xff]   ;;  %s204_s29 = scalar_lea.vmem %s1329_s4, %s999_s26 }
  0x10   : > { %374 = vmatpush1.bf16.msra.mxu0 %v1034_v7  ;;  %703 = vmatpush1.bf16.msra.mxu1 %v1034_v7  ;;  %v259_v11 = vld [vmem:[%s197_s9] sm:$0xff]  ;;  %v260_v12 = vld [vmem:[%s197_s9 + $0x8] sm:$0xff]  ;;  %v988_v18 = vld [vmem:[%s197_s9 + $0x10] sm:$0xff] }
  0x11   : > { %375 = vmatprep.subr.bf16.mxu0 %v1035_v8  ;;  %704 = vmatprep.subr.bf16.mxu1 %v1035_v8  ;;  %v268_v15 = vmul.f32 %v938_v13, %v259_v11  ;;  %v269_v16 = vmul.f32 %v938_v13, %v260_v12  ;;  %v989_v21 = vld [vmem:[%s197_s9 + $0x18] sm:$0xff]  ;;  %v677_v25 = vmul.f32 %v988_v18, %v938_v13  ;;  %v1064_v51 = vld [vmem:[%s1326_s1 + $0x44] ss:$8 sps:$4 sm:$0xff]   ;;  %v1062_v52 = vld [vmem:[%s1326_s1 + $0x40] ss:$8 sps:$4 sm:$0xff]  }
  0x12   : > { %v678_v26 = vmul.f32 %v989_v21, %v938_v13  ;;  %v1067_v53 = vld [vmem:[%s1326_s1 + $0x54] ss:$8 sps:$4 sm:$0xff]   ;;  %v1065_v54 = vld [vmem:[%s1326_s1 + $0x50] ss:$8 sps:$4 sm:$0xff]   ;;  %v1070_v55 = vld [vmem:[%s1326_s1 + $0x64] ss:$8 sps:$4 sm:$0xff]  }
  0x13   : > { %v277_v19 = vadd.f32 %v939_v17, %v268_v15  ;;  %v278_v20 = vadd.f32 %v939_v17, %v269_v16  ;;  %v686_v29 = vadd.f32 %v939_v17, %v677_v25  ;;  %v1068_v56 = vld [vmem:[%s1326_s1 + $0x60] ss:$8 sps:$4 sm:$0xff]   ;;  %v1073_v57 = vld [vmem:[%s1326_s1 + $0x74] ss:$8 sps:$4 sm:$0xff]   ;;  %v1071_v58 = vld [vmem:[%s1326_s1 + $0x70] ss:$8 sps:$4 sm:$0xff]  }
  0x14   : > { %376 = vmatpush1.bf16.msra.mxu0 %v1037_v9  ;;  %705 = vmatpush1.bf16.msra.mxu1 %v1037_v9  ;;  %v687_v30 = vadd.f32 %v939_v17, %v678_v26  ;;  %v1076_v61 = vld [vmem:[%s1326_s1 + $0x104] ss:$8 sps:$4 sm:$0xff]   ;;  %v1074_v0 = vld [vmem:[%s1326_s1 + $0x100] ss:$8 sps:$4 sm:$0xff]   ;;  %v1079_v1 = vld [vmem:[%s1326_s1 + $0x114] ss:$8 sps:$4 sm:$0xff]  }
  0x15   : > { %377 = vmatprep.subr.bf16.mxu0 %v1038_v10  ;;  %706 = vmatprep.subr.bf16.mxu1 %v1038_v10  ;;  %v279_v23 = vmax.f32 %v277_v19, 0.0  ;;  %v280_v24 = vmax.f32 %v278_v20, 0.0  ;;  %v688_v34 = vmax.f32 %v686_v29, 0.0  ;;  %v1077_v3 = vld [vmem:[%s1326_s1 + $0x110] ss:$8 sps:$4 sm:$0xff]  }
  0x16   : > { %v689_v35 = vmax.f32 %v687_v30, 0.0  ;;  %v1082_v4 = vld [vmem:[%s1326_s1 + $0x124] ss:$8 sps:$4 sm:$0xff]   ;;  %v1080_v5 = vld [vmem:[%s1326_s1 + $0x120] ss:$8 sps:$4 sm:$0xff]  }
  0x17   : > { %281 = vst [vmem:[#allocation2 + $0x1] sm:$0xff] %v279_v23  ;;  %282 = vst [vmem:[#allocation2 + $0x9] sm:$0xff] %v280_v24  ;;  %v288_v42 = vpack.c.bf16 %v280_v24, %v279_v23  ;;  %v1085_v6 = vld [vmem:[%s1326_s1 + $0x134] ss:$8 sps:$4 sm:$0xff]   ;;  %v1083_v7 = vld [vmem:[%s1326_s1 + $0x130] ss:$8 sps:$4 sm:$0xff]  }
  0x18   : > { %378 = vmatpush1.bf16.msra.mxu0 %v1040_v14  ;;  %707 = vmatpush1.bf16.msra.mxu1 %v1040_v14  ;;  %v697_v43 = vpack.c.bf16 %v689_v35, %v688_v34  ;;  %v1086_v8 = vld [vmem:[%s1326_s1 + $0x140] ss:$8 sps:$4 sm:$0xff]   ;;  %v1091_v9 = vld [vmem:[%s1326_s1 + $0x154] ss:$8 sps:$4 sm:$0xff]   ;;  %v1089_v10 = vld [vmem:[%s1326_s1 + $0x150] ss:$8 sps:$4 sm:$0xff]  }
  0x19   : > { %379 = vmatprep.subr.bf16.mxu0 %v1041_v22  ;;  %708 = vmatprep.subr.bf16.mxu1 %v1041_v22  ;;  %v1094_v11 = vld [vmem:[%s1326_s1 + $0x164] ss:$8 sps:$4 sm:$0xff]   ;;  %v1092_v12 = vld [vmem:[%s1326_s1 + $0x160] ss:$8 sps:$4 sm:$0xff]   ;;  %v1097_v13 = vld [vmem:[%s1326_s1 + $0x174] ss:$8 sps:$4 sm:$0xff]  }
  0x1a   : > { %v1095_v14 = vld [vmem:[%s1326_s1 + $0x170] ss:$8 sps:$4 sm:$0xff]  }
  0x1c   : > { %380 = vmatpush1.bf16.msra.mxu0 %v1043_v27  ;;  %709 = vmatpush1.bf16.msra.mxu1 %v1043_v27 }
  0x1d   : > { %381 = vmatprep.subr.bf16.mxu0 %v1044_v28  ;;  %710 = vmatprep.subr.bf16.mxu1 %v1044_v28 }
  0x1e   : > { %v1203_v36 = vld [vmem:[#allocation2] sm:$0xff]  ;;  %v1205_v37 = vld [vmem:[#allocation2 + $0x8] sm:$0xff] }
  0x1f   : > { %v1207_v38 = vld [vmem:[#allocation2 + $0x2] sm:$0xff]  ;;  %v1209_v39 = vld [vmem:[#allocation2 + $0xa] sm:$0xff]  ;;  %v287_v62 = vpack.c.bf16 %v1205_v37, %v1203_v36 }
  0x20   : > { %382 = vmatpush1.bf16.msra.mxu0 %v1046_v31  ;;  %711 = vmatpush1.bf16.msra.mxu1 %v1046_v31  ;;  %690 = vst [vmem:[#allocation2 + $0x1] sm:$0xff] %v688_v34  ;;  %691 = vst [vmem:[#allocation2 + $0x9] sm:$0xff] %v689_v35  ;;  %v535_v41 = vpack.c.bf16 %v1209_v39, %v1207_v38 }
  0x21   : > { %383 = vmatprep.subr.bf16.mxu0 %v1047_v32  ;;  %712 = vmatprep.subr.bf16.mxu1 %v1047_v32 }
  0x24   : > { %384 = vmatpush1.bf16.msra.mxu0 %v1049_v33  ;;  %713 = vmatpush1.bf16.msra.mxu1 %v1049_v33 }
  0x25   : > { %492 = vmatprep.subr.bf16.mxu0 %v1052_v40  ;;  %741 = vmatprep.subr.bf16.mxu1 %v1052_v40 }
  0x27   : > { %402 = vmatmul.mubr.bf16.vlgmr.msra.gmra.mrb[0].mxu0 %v288_v42  ;;  %731 = vmatmul.mubr.bf16.vlgmr.msra.gmra.mrb[0].mxu1 %v697_v43  ;;  %v692_v59 = vld [vmem:[#allocation2] sm:$0xff]  ;;  %v693_v60 = vld [vmem:[#allocation2 + $0x8] sm:$0xff] }
  0x28   : > { %493 = vmatpush1.bf16.msra.mxu0 %v1050_v44  ;;  %742 = vmatpush1.bf16.msra.mxu1 %v1050_v44  ;;  %v696_v63 = vpack.c.bf16 %v693_v60, %v692_v59  ;;  %v694_v15 = vld [vmem:[#allocation2 + $0x2] sm:$0xff]  ;;  %v695_v16 = vld [vmem:[#allocation2 + $0xa] sm:$0xff] }
  0x29   : > { %494 = vmatprep.subr.bf16.mxu0 %v1055_v45  ;;  %743 = vmatprep.subr.bf16.mxu1 %v1055_v45  ;;  %v784_v17 = vpack.c.bf16 %v695_v16, %v694_v15 }
  0x2a   : > { %524 = vmatprep.mubr.bf16.mxu0 %v1106_v2  ;;  %773 = vmatprep.mubr.bf16.mxu1 %v1106_v2 }
  0x2c   : > { %495 = vmatpush1.bf16.msra.mxu0 %v1053_v46  ;;  %744 = vmatpush1.bf16.msra.mxu1 %v1053_v46 }
  0x2d   : > { %496 = vmatprep.subr.bf16.mxu0 %v1058_v47  ;;  %745 = vmatprep.subr.bf16.mxu1 %v1058_v47 }
  0x30   : > { %497 = vmatpush1.bf16.msra.mxu0 %v1056_v48  ;;  %746 = vmatpush1.bf16.msra.mxu1 %v1056_v48 }
  0x31   : > { %498 = vmatprep.subr.bf16.mxu0 %v1061_v49  ;;  %747 = vmatprep.subr.bf16.mxu1 %v1061_v49 }
  0x34   : > { %499 = vmatpush1.bf16.msra.mxu0 %v1059_v50  ;;  %748 = vmatpush1.bf16.msra.mxu1 %v1059_v50 }
  0x35   : > { %500 = vmatprep.subr.bf16.mxu0 %v1064_v51  ;;  %749 = vmatprep.subr.bf16.mxu1 %v1064_v51 }
  0x38   : > { %501 = vmatpush1.bf16.msra.mxu0 %v1062_v52  ;;  %750 = vmatpush1.bf16.msra.mxu1 %v1062_v52 }
  0x39   : > { %502 = vmatprep.subr.bf16.mxu0 %v1067_v53  ;;  %751 = vmatprep.subr.bf16.mxu1 %v1067_v53 }
  0x3c   : > { %503 = vmatpush1.bf16.msra.mxu0 %v1065_v54  ;;  %752 = vmatpush1.bf16.msra.mxu1 %v1065_v54 }
  0x3d   : > { %504 = vmatprep.subr.bf16.mxu0 %v1070_v55  ;;  %753 = vmatprep.subr.bf16.mxu1 %v1070_v55 }
  0x40   : > { %505 = vmatpush1.bf16.msra.mxu0 %v1068_v56  ;;  %754 = vmatpush1.bf16.msra.mxu1 %v1068_v56 }
  0x41   : > { %506 = vmatprep.subr.bf16.mxu0 %v1073_v57  ;;  %755 = vmatprep.subr.bf16.mxu1 %v1073_v57 }
  0x44   : > { %507 = vmatpush1.bf16.msra.mxu0 %v1071_v58  ;;  %756 = vmatpush1.bf16.msra.mxu1 %v1071_v58 }
  0x45   : > { %616 = vmatprep.subr.bf16.mxu0 %v1076_v61  ;;  %785 = vmatprep.subr.bf16.mxu1 %v1076_v61 }
  0x47   : > { %525 = vmatmul.mubr.bf16.vlgmr.msra.gmra.mrb[0].mxu0 %v287_v62  ;;  %774 = vmatmul.mubr.bf16.vlgmr.msra.gmra.mrb[0].mxu1 %v696_v63 }
  0x48   : > { %617 = vmatpush1.bf16.msra.mxu0 %v1074_v0  ;;  %786 = vmatpush1.bf16.msra.mxu1 %v1074_v0 }
  0x49   : > { %618 = vmatprep.subr.bf16.mxu0 %v1079_v1  ;;  %787 = vmatprep.subr.bf16.mxu1 %v1079_v1 }
  0x4a   : > { %648 = vmatprep.mubr.bf16.mxu0 %v1106_v2  ;;  %817 = vmatprep.mubr.bf16.mxu1 %v1106_v2  ;;  %v1088_v2 = vld [vmem:[%s1326_s1 + $0x144] ss:$8 sps:$4 sm:$0xff]  }
  0x4c   : > { %619 = vmatpush1.bf16.msra.mxu0 %v1077_v3  ;;  %788 = vmatpush1.bf16.msra.mxu1 %v1077_v3 }
  0x4d   : > { %620 = vmatprep.subr.bf16.mxu0 %v1082_v4  ;;  %789 = vmatprep.subr.bf16.mxu1 %v1082_v4 }
  0x50   : > { %621 = vmatpush1.bf16.msra.mxu0 %v1080_v5  ;;  %790 = vmatpush1.bf16.msra.mxu1 %v1080_v5 }
  0x51   : > { %622 = vmatprep.subr.bf16.mxu0 %v1085_v6  ;;  %791 = vmatprep.subr.bf16.mxu1 %v1085_v6 }
  0x54   : > { %623 = vmatpush1.bf16.msra.mxu0 %v1083_v7  ;;  %792 = vmatpush1.bf16.msra.mxu1 %v1083_v7 }
  0x55   : > { %624 = vmatprep.subr.bf16.mxu0 %v1088_v2  ;;  %793 = vmatprep.subr.bf16.mxu1 %v1088_v2 }
  0x58   : > { %625 = vmatpush1.bf16.msra.mxu0 %v1086_v8  ;;  %794 = vmatpush1.bf16.msra.mxu1 %v1086_v8 }
  0x59   : > { %626 = vmatprep.subr.bf16.mxu0 %v1091_v9  ;;  %795 = vmatprep.subr.bf16.mxu1 %v1091_v9 }
  0x5c   : > { %627 = vmatpush1.bf16.msra.mxu0 %v1089_v10  ;;  %796 = vmatpush1.bf16.msra.mxu1 %v1089_v10 }
  0x5d   : > { %628 = vmatprep.subr.bf16.mxu0 %v1094_v11  ;;  %797 = vmatprep.subr.bf16.mxu1 %v1094_v11 }
  0x60   : > { %629 = vmatpush1.bf16.msra.mxu0 %v1092_v12  ;;  %798 = vmatpush1.bf16.msra.mxu1 %v1092_v12 }
  0x61   : > { %630 = vmatprep.subr.bf16.mxu0 %v1097_v13  ;;  %799 = vmatprep.subr.bf16.mxu1 %v1097_v13 }
  0x64   : > { %631 = vmatpush1.bf16.msra.mxu0 %v1095_v14  ;;  %800 = vmatpush1.bf16.msra.mxu1 %v1095_v14 }
  0x67   : > { %649 = vmatmul.mubr.bf16.vlgmr.msra.gmra.mrb[0].mxu0 %v535_v41  ;;  %818 = vmatmul.mubr.bf16.vlgmr.msra.gmra.mrb[0].mxu1 %v784_v17 }
 0x13a   : > { %v650_v18 = vpop.f32.mrb[0].mxu0  ;;  %v819_v19 = vpop.f32.mrb[0].mxu1 }
 0x13b   : > { %663 = vst [vmem:[%s204_s29] sm:$0xff] %v650_v18  ;;  %v652_v20 = vpop.f32.mrb[1].mxu0  ;;  %v821_v21 = vpop.f32.mrb[1].mxu1  ;;  %992 = vst [vmem:[%s204_s29 + $0x20] sm:$0xff] %v819_v19 }
 0x13c   : > { %664 = vst [vmem:[%s204_s29 + $0x8] sm:$0xff] %v652_v20  ;;  %v654_v22 = vpop.f32.mrb[2].mxu0  ;;  %v823_v23 = vpop.f32.mrb[2].mxu1  ;;  %993 = vst [vmem:[%s204_s29 + $0x28] sm:$0xff] %v821_v21 }
 0x13d   : > { %665 = vst [vmem:[%s204_s29 + $0x10] sm:$0xff] %v654_v22  ;;  %v656_v24 = vpop.f32.mrb[3].mxu0  ;;  %v825_v25 = vpop.f32.mrb[3].mxu1  ;;  %994 = vst [vmem:[%s204_s29 + $0x30] sm:$0xff] %v823_v23 }
 0x13e   : > { %666 = vst [vmem:[%s204_s29 + $0x18] sm:$0xff] %v656_v24  ;;  %995 = vst [vmem:[%s204_s29 + $0x38] sm:$0xff] %v825_v25 }
 0x13f PF: > { %s14_s15 = sadd.s32 1, %s1104_s15  }
 0x140   : > { %p11_p4 = scmp.ge.s32.totalorder %s14_s15, 4  }
 0x142   :  { %13 = sbr.rel (!%p11_p4) target bundleno = 1 (0x1), region = 70 }

</bundles_post_ra>
